<compile_context>
chip_gen: v7x
topology: tpu7x:2x2x1
jax: 0.10.0
libtpu: 0.0.40
codegen_flags: <defaults>
</compile_context>

<pallas_src>
import functools

import jax
import jax.numpy as jnp
import numpy as np
from jax.experimental import pallas as pl
from jax.experimental.pallas import tpu as pltpu


def _axis_onehot(i0, frac, size, offset, n_pts):
    """(size, n_pts): at most two non-zeros per column, (1-frac) at row (i0-offset)
    and frac at row (i0+1-offset). Rows falling outside [0, size) contribute
    nothing — exactly the reference's constant-zero pad border."""
    rows = jax.lax.broadcasted_iota(jnp.int32, (size, n_pts), 0) + offset
    lo = jnp.where(rows == i0, 1.0 - frac, 0.0)
    hi = jnp.where(rows == i0 + 1, frac, 0.0)
    return lo + hi


def _point_setup(pts, D, W, H):
    """k-invariant per-point math. pts: (3, Nt) f32, rows = (d, w, h).
    Returns wwh (W*H, Nt) f32, id0 (1, Nt) i32, dpd (1, Nt) f32."""
    n_pts = pts.shape[1]
    # PyTorch: points += 2 then clamp(0, dim + 2) in the zero-padded volume.
    d = jnp.clip(pts[0:1, :] + 2.0, 0.0, float(D + 2))
    w = jnp.clip(pts[1:2, :] + 2.0, 0.0, float(W + 2))
    h = jnp.clip(pts[2:3, :] + 2.0, 0.0, float(H + 2))
    fd, fw, fh = jnp.floor(d), jnp.floor(w), jnp.floor(h)
    # Corner indices mapped back to the *unpadded* grid (range [-2, dim]);
    # out-of-range corners match no one-hot row -> zero weight (implicit border).
    id0 = fd.astype(jnp.int32) - 2
    iw0 = fw.astype(jnp.int32) - 2
    ih0 = fh.astype(jnp.int32) - 2
    ww = _axis_onehot(iw0, w - fw, W, 0, n_pts)      # (W, Nt)
    wh = _axis_onehot(ih0, h - fh, H, 0, n_pts)      # (H, Nt)
    # Separable W*H weight block; the reshape is a free reinterpret when H is a
    # multiple of 8 (sublane-aligned merge).
    wwh = (ww[:, None, :] * wh[None, :, :]).reshape(W * H, n_pts)
    return wwh, id0, d - fd


# TODO(synk): only the default 'trilinear' branch of ThreeDSample is implemented
#             (the 'nearest' rounding mode is not reproduced).
def _trilerp_kernel(pts_ref, vals_ref, out_ref,
                    acc_ref, wwh_ref, id0_ref, dpd_ref,
                    *, D, W, H, d_tile, d_chunk, num_k):
    k = pl.program_id(2)                  # reduction step over D tiles (innermost axis)
    n_pts = pts_ref.shape[2]

    if num_k == 1:
        # Single reduction step: nothing to hoist, no accumulator round-trip needed.
        wwh, id0, dpd = _point_setup(pts_ref[0], D, W, H)
    else:
        # Hoist all k-invariant point math: compute once per (b, j) tile at k == 0,
        # stash in VMEM scratch, reuse for k > 0.
        @pl.when(k == 0)
        def _():
            wwh0, id00, dpd0 = _point_setup(pts_ref[0], D, W, H)
            wwh_ref[...] = wwh0
            id0_ref[...] = id00
            dpd_ref[...] = dpd0

        wwh = wwh_ref[...]
        id0 = id0_ref[...]
        dpd = dpd_ref[...]

    # Per-step work: build the d-axis one-hot and expand to trilinear weights in
    # bounded d-plane chunks (never materializing the dense (f_tile, n_tile) weight
    # matrix); each chunk feeds one accumulate MXU matmul (bf16 in, f32 accumulate).
    chunk_f = d_chunk * W * H
    step_acc = None
    for c in range(d_tile // d_chunk):
        wd = _axis_onehot(id0, dpd, d_chunk, k * d_tile + c * d_chunk, n_pts)
        wmat = (wd[:, None, :] * wwh[None, :, :]).reshape(chunk_f, n_pts)
        vchunk = vals_ref[0, :, c * chunk_f:(c + 1) * chunk_f]      # (C, chunk_f)
        part = jnp.dot(vchunk, wmat.astype(vchunk.dtype),
                       preferred_element_type=jnp.float32)
        step_acc = part if step_acc is None else step_acc + part

    if num_k == 1:
        out_ref[0] = step_acc.astype(out_ref.dtype)
    else:
        @pl.when(k == 0)
        def _():
            acc_ref[...] = step_acc       # init with first matmul (no separate zero-fill)

        @pl.when(k != 0)
        def _():
            acc_ref[...] += step_acc

        @pl.when(k == num_k - 1)
        def _():
            out_ref[0] = acc_ref[...].astype(out_ref.dtype)


def three_d_sample(points, values, *, n_tile=128, d_tile=None, d_chunk=None,
                   vals_dtype=jnp.bfloat16):
    """Pallas implementation of ThreeDSample.forward (method='trilinear').

    points: (B, N, 3, 1) float32, dim 2 is (d, w, h) coordinates.
    values: (B, C, D, W, H) float32.
    returns: (B, N, C) float32 — same as the PyTorch module.
    """
    B, N = points.shape[0], points.shape[1]
    C, D, W, H = values.shape[1], values.shape[2], values.shape[3], values.shape[4]
    F = D * W * H
    vbytes = jnp.dtype(vals_dtype).itemsize

    n_tile = min(n_tile, N)
    assert N % n_tile == 0, "n_tile must divide N"
    assert n_tile == N or n_tile % 128 == 0, (
        "N tile must be a multiple of 128 (or cover all points)")

    if d_tile is None:
        # Prefer full-volume residency per batch: the vals block index is then
        # constant over the inner N loop -> one HBM read of the volume per batch.
        valid = [d for d in range(1, D + 1)
                 if D % d == 0 and (d == D or (d * W * H) % 128 == 0)]
        fitting = [d for d in valid if 2 * C * d * W * H * vbytes <= (8 << 20)]
        d_tile = max(fitting) if fitting else min(valid)
    assert D % d_tile == 0, "d_tile must divide D"
    f_tile = d_tile * W * H
    assert f_tile == F or f_tile % 128 == 0, (
        "F tile must be a multiple of 128 (or cover the full volume)")
    num_k = D // d_tile

    if d_chunk is None:
        # Cap the in-kernel (d_chunk*W*H, n_tile) f32 weight block at ~1 MiB.
        per_plane = W * H * n_tile * 4
        d_chunk = max(1, min(d_tile, (1 << 20) // max(per_plane, 1)))
        while d_tile % d_chunk:
            d_chunk -= 1
    assert d_tile % d_chunk == 0, "d_chunk must divide d_tile"

    # glue: flatten spatial dims (no zero-pad — the border is handled in-kernel);
    # bf16 halves the volume's HBM/VMEM traffic, the matmul accumulates in f32.
    vflat = values.reshape(B, C, F).astype(vals_dtype)
    # glue: (B, N, 3, 1) -> (B, 3, N) so the point axis is the 128-wide lane axis
    pts = jnp.transpose(points[:, :, :, 0], (0, 2, 1)).astype(jnp.float32)

    kernel = functools.partial(_trilerp_kernel, D=D, W=W, H=H,
                               d_tile=d_tile, d_chunk=d_chunk, num_k=num_k)

    # Explicit scoped-VMEM sizing: vals double buffer + pts/out buffers + scratch
    # + chunked weight temporaries, with headroom; never below the 32 MiB default,
    # capped at v7x's 64 MiB physical VMEM.
    need = (2 * C * f_tile * vbytes              # vals (double-buffered input)
            + 2 * 3 * n_tile * 4                 # pts
            + 2 * C * n_tile * 4                 # out
            + C * n_tile * 4                     # accumulator scratch
            + (W * H + 2) * n_tile * 4           # wwh / id0 / dpd scratch
            + 3 * d_chunk * W * H * n_tile * 4)  # per-chunk weight temporaries
    vmem_limit = min(64 << 20, max(int(1.3 * need) + (2 << 20), 32 << 20))

    out_cn = pl.pallas_call(
        kernel,
        out_shape=jax.ShapeDtypeStruct((B, C, N), jnp.float32),
        grid_spec=pltpu.PrefetchScalarGridSpec(
            num_scalar_prefetch=0,
            grid=(B, N // n_tile, num_k),
            in_specs=[
                pl.BlockSpec((1, 3, n_tile), lambda b, j, k: (b, 0, j)),
                pl.BlockSpec((1, C, f_tile), lambda b, j, k: (b, 0, k)),
            ],
            out_specs=pl.BlockSpec((1, C, n_tile), lambda b, j, k: (b, 0, j)),
            scratch_shapes=[
                pltpu.VMEM((C, n_tile), jnp.float32),      # accumulator
                pltpu.VMEM((W * H, n_tile), jnp.float32),  # hoisted wwh
                pltpu.VMEM((1, n_tile), jnp.int32),        # hoisted id0
                pltpu.VMEM((1, n_tile), jnp.float32),      # hoisted dpd
            ],
        ),
        compiler_params=pltpu.CompilerParams(
            dimension_semantics=("parallel", "parallel", "arbitrary"),
            vmem_limit_bytes=vmem_limit),
    )(pts, vflat)

    # glue: (B, C, N) -> (B, N, C) to match the PyTorch output layout. Kept in the
    # wrapper because C < 128 would force masked stores if the kernel emitted a
    # C-minor output; for C >= 128 swap the matmul operands instead.
    return jnp.transpose(out_cn, (0, 2, 1))


def three_d_sample_ref(points, values):
    """Pure-JAX replica of the PyTorch forward (trilinear branch), for checking."""
    B, N = points.shape[0], points.shape[1]
    D, W, H = values.shape[2], values.shape[3], values.shape[4]
    vpad = jnp.pad(values, ((0, 0), (0, 0), (2, 2), (2, 2), (2, 2)))
    pts = points + 2.0
    maxes = jnp.array([D + 2, W + 2, H + 2], jnp.float32).reshape(1, 1, 3, 1)
    pts = jnp.clip(pts, 0.0, maxes)
    dp = pts - jnp.floor(pts)
    c000 = jnp.floor(pts).astype(jnp.int32)
    c111 = jnp.ceil(pts).astype(jnp.int32)
    b = jnp.arange(B)[:, None]

    def gather(c):                          # c: (B, N, 3, 1) int -> (B, N, C)
        return vpad[b, :, c[:, :, 0, 0], c[:, :, 1, 0], c[:, :, 2, 0]]

    def off(dd, ww, hh):
        return c000 + jnp.array([dd, ww, hh], jnp.int32).reshape(1, 1, 3, 1)

    d000 = gather(c000)
    d001 = gather(off(0, 0, 1))
    d011 = gather(off(0, 1, 1))
    d010 = gather(off(0, 1, 0))
    d100 = gather(off(1, 0, 0))
    d110 = gather(off(1, 1, 0))
    d101 = gather(off(1, 0, 1))
    d111 = gather(c111)
    dp0, dp1, dp2 = dp[:, :, 0, :], dp[:, :, 1, :], dp[:, :, 2, :]
    d00 = d000 * (1.0 - dp0) + d100 * dp0
    d01 = d001 * (1.0 - dp0) + d101 * dp0
    d10 = d010 * (1.0 - dp0) + d110 * dp0
    d11 = d011 * (1.0 - dp0) + d111 * dp0
    d0 = d00 * (1.0 - dp1) + d10 * dp1
    d1 = d01 * (1.0 - dp1) + d11 * dp1
    return d0 * (1.0 - dp2) + d1 * dp2


if __name__ == "__main__":
    key = jax.random.PRNGKey(0)
    kp, kv = jax.random.split(key)

    B, N, C, D, W, H = 2, 256, 4, 8, 8, 8
    # points slightly outside the grid to exercise the clamp / zero-border path
    points = jax.random.uniform(kp, (B, N, 3, 1), jnp.float32,
                                minval=-1.5, maxval=float(D) + 1.5)
    values = jax.random.normal(kv, (B, C, D, W, H), jnp.float32)

    ref = three_d_sample_ref(points, values)

    # 1) default config: volume VMEM-resident (d_tile = D), bf16 matmul.
    out_bf16 = jax.block_until_ready(three_d_sample(points, values))
    np.testing.assert_allclose(np.asarray(out_bf16), np.asarray(ref),
                               atol=3e-2, rtol=3e-2)

    # 2) same residency path in f32 — tighter check of the weight construction.
    out_f32 = jax.block_until_ready(
        three_d_sample(points, values, vals_dtype=jnp.float32))
    np.testing.assert_allclose(np.asarray(out_f32), np.asarray(ref),
                               atol=1e-2, rtol=1e-2)

    # 3) multi-step reduction over D with in-kernel d-plane chunking — exercises the
    #    k-invariant hoist, the accumulator init/accumulate/finalize, and chunked dots.
    out_red = jax.block_until_ready(
        three_d_sample(points, values, n_tile=128, d_tile=4, d_chunk=2,
                       vals_dtype=jnp.float32))
    np.testing.assert_allclose(np.asarray(out_red), np.asarray(ref),
                               atol=1e-2, rtol=1e-2)

    print("KERNEL_OK")
</pallas_src>

<mosaic_0001>
module attributes {stable_mosaic.version = 11 : i64} {
  func.func @_trilerp_kernel(%arg0: i32, %arg1: i32, %arg2: i32, %arg3: memref<1x3x128xf32, #tpu.memory_space<vmem>>, %arg4: memref<1x4x512xbf16, #tpu.memory_space<vmem>>, %arg5: memref<1x4x128xf32, #tpu.memory_space<vmem>>, %arg6: memref<4x128xf32, #tpu.memory_space<vmem>>, %arg7: memref<64x128xf32, #tpu.memory_space<vmem>>, %arg8: memref<1x128xi32, #tpu.memory_space<vmem>>, %arg9: memref<1x128xf32, #tpu.memory_space<vmem>>) attributes {dimension_semantics = [#tpu.dimension_semantics<parallel>, #tpu.dimension_semantics<parallel>, #tpu.dimension_semantics<arbitrary>], iteration_bounds = array<i64: 2, 2, 1>, scalar_prefetch = 0 : i64, scratch_operands = 4 : i64, tpu.core_type = #tpu.core_type<tc>, window_params = [{transform_indices = @transform_0, window_bounds = array<i64: 1, 3, 128>}, {transform_indices = @transform_1, window_bounds = array<i64: 1, 4, 512>}, {transform_indices = @transform_2, window_bounds = array<i64: 1, 4, 128>}]} {
    %c0 = arith.constant 0 : index
    %c0_0 = arith.constant 0 : index
    %c0_1 = arith.constant 0 : index
    %0 = vector.load %arg3[%c0, %c0_0, %c0_1] : memref<1x3x128xf32, #tpu.memory_space<vmem>>, vector<1x3x128xf32>
    %1 = vector.shape_cast %0 : vector<1x3x128xf32> to vector<3x128xf32>
    %2 = vector.extract_strided_slice %1 {offsets = [0, 0], sizes = [1, 128], strides = [1, 1]} : vector<3x128xf32> to vector<1x128xf32>
    %cst = arith.constant 2.000000e+00 : f32
    %3 = vector.broadcast %cst : f32 to vector<1x128xf32>
    %4 = arith.addf %2, %3 : vector<1x128xf32>
    %cst_2 = arith.constant 0.000000e+00 : f32
    %cst_3 = arith.constant 1.000000e+01 : f32
    %5 = vector.broadcast %cst_2 : f32 to vector<1x128xf32>
    %6 = arith.maximumf %5, %4 : vector<1x128xf32>
    %7 = vector.broadcast %cst_3 : f32 to vector<1x128xf32>
    %8 = arith.minimumf %7, %6 : vector<1x128xf32>
    %9 = vector.extract_strided_slice %1 {offsets = [1, 0], sizes = [1, 128], strides = [1, 1]} : vector<3x128xf32> to vector<1x128xf32>
    %cst_4 = arith.constant 2.000000e+00 : f32
    %10 = vector.broadcast %cst_4 : f32 to vector<1x128xf32>
    %11 = arith.addf %9, %10 : vector<1x128xf32>
    %cst_5 = arith.constant 0.000000e+00 : f32
    %cst_6 = arith.constant 1.000000e+01 : f32
    %12 = vector.broadcast %cst_5 : f32 to vector<1x128xf32>
    %13 = arith.maximumf %12, %11 : vector<1x128xf32>
    %14 = vector.broadcast %cst_6 : f32 to vector<1x128xf32>
    %15 = arith.minimumf %14, %13 : vector<1x128xf32>
    %16 = vector.extract_strided_slice %1 {offsets = [2, 0], sizes = [1, 128], strides = [1, 1]} : vector<3x128xf32> to vector<1x128xf32>
    %cst_7 = arith.constant 2.000000e+00 : f32
    %17 = vector.broadcast %cst_7 : f32 to vector<1x128xf32>
    %18 = arith.addf %16, %17 : vector<1x128xf32>
    %cst_8 = arith.constant 0.000000e+00 : f32
    %cst_9 = arith.constant 1.000000e+01 : f32
    %19 = vector.broadcast %cst_8 : f32 to vector<1x128xf32>
    %20 = arith.maximumf %19, %18 : vector<1x128xf32>
    %21 = vector.broadcast %cst_9 : f32 to vector<1x128xf32>
    %22 = arith.minimumf %21, %20 : vector<1x128xf32>
    %23 = math.floor %8 : vector<1x128xf32>
    %24 = math.floor %15 : vector<1x128xf32>
    %25 = math.floor %22 : vector<1x128xf32>
    %26 = arith.fptosi %23 : vector<1x128xf32> to vector<1x128xi32>
    %c2_i32 = arith.constant 2 : i32
    %27 = vector.broadcast %c2_i32 : i32 to vector<1x128xi32>
    %28 = arith.subi %26, %27 : vector<1x128xi32>
    %29 = arith.fptosi %24 : vector<1x128xf32> to vector<1x128xi32>
    %c2_i32_10 = arith.constant 2 : i32
    %30 = vector.broadcast %c2_i32_10 : i32 to vector<1x128xi32>
    %31 = arith.subi %29, %30 : vector<1x128xi32>
    %32 = arith.fptosi %25 : vector<1x128xf32> to vector<1x128xi32>
    %c2_i32_11 = arith.constant 2 : i32
    %33 = vector.broadcast %c2_i32_11 : i32 to vector<1x128xi32>
    %34 = arith.subi %32, %33 : vector<1x128xi32>
    %35 = arith.subf %15, %24 : vector<1x128xf32>
    %36 = tpu.iota {dimensions = array<i32: 0>} : vector<8x128xi32>
    %c0_i32 = arith.constant 0 : i32
    %37 = vector.broadcast %c0_i32 : i32 to vector<8x128xi32>
    %38 = arith.addi %36, %37 : vector<8x128xi32>
    %39 = vector.broadcast %31 : vector<1x128xi32> to vector<8x128xi32>
    %40 = arith.cmpi eq, %38, %39 : vector<8x128xi32>
    %cst_12 = arith.constant 1.000000e+00 : f32
    %41 = vector.broadcast %cst_12 : f32 to vector<1x128xf32>
    %42 = arith.subf %41, %35 : vector<1x128xf32>
    %cst_13 = arith.constant 0.000000e+00 : f32
    %43 = vector.shape_cast %42 : vector<1x128xf32> to vector<1x128xf32>
    %44 = vector.broadcast %43 : vector<1x128xf32> to vector<8x128xf32>
    %45 = vector.broadcast %cst_13 : f32 to vector<8x128xf32>
    %46 = arith.select %40, %44, %45 : vector<8x128xi1>, vector<8x128xf32>
    %c1_i32 = arith.constant 1 : i32
    %47 = vector.broadcast %c1_i32 : i32 to vector<1x128xi32>
    %48 = arith.addi %31, %47 : vector<1x128xi32>
    %49 = vector.broadcast %48 : vector<1x128xi32> to vector<8x128xi32>
    %50 = arith.cmpi eq, %38, %49 : vector<8x128xi32>
    %cst_14 = arith.constant 0.000000e+00 : f32
    %51 = vector.shape_cast %35 : vector<1x128xf32> to vector<1x128xf32>
    %52 = vector.broadcast %51 : vector<1x128xf32> to vector<8x128xf32>
    %53 = vector.broadcast %cst_14 : f32 to vector<8x128xf32>
    %54 = arith.select %50, %52, %53 : vector<8x128xi1>, vector<8x128xf32>
    %55 = arith.addf %46, %54 : vector<8x128xf32>
    %56 = arith.subf %22, %25 : vector<1x128xf32>
    %57 = tpu.iota {dimensions = array<i32: 0>} : vector<8x128xi32>
    %c0_i32_15 = arith.constant 0 : i32
    %58 = vector.broadcast %c0_i32_15 : i32 to vector<8x128xi32>
    %59 = arith.addi %57, %58 : vector<8x128xi32>
    %60 = vector.broadcast %34 : vector<1x128xi32> to vector<8x128xi32>
    %61 = arith.cmpi eq, %59, %60 : vector<8x128xi32>
    %cst_16 = arith.constant 1.000000e+00 : f32
    %62 = vector.broadcast %cst_16 : f32 to vector<1x128xf32>
    %63 = arith.subf %62, %56 : vector<1x128xf32>
    %cst_17 = arith.constant 0.000000e+00 : f32
    %64 = vector.shape_cast %63 : vector<1x128xf32> to vector<1x128xf32>
    %65 = vector.broadcast %64 : vector<1x128xf32> to vector<8x128xf32>
    %66 = vector.broadcast %cst_17 : f32 to vector<8x128xf32>
    %67 = arith.select %61, %65, %66 : vector<8x128xi1>, vector<8x128xf32>
    %c1_i32_18 = arith.constant 1 : i32
    %68 = vector.broadcast %c1_i32_18 : i32 to vector<1x128xi32>
    %69 = arith.addi %34, %68 : vector<1x128xi32>
    %70 = vector.broadcast %69 : vector<1x128xi32> to vector<8x128xi32>
    %71 = arith.cmpi eq, %59, %70 : vector<8x128xi32>
    %cst_19 = arith.constant 0.000000e+00 : f32
    %72 = vector.shape_cast %56 : vector<1x128xf32> to vector<1x128xf32>
    %73 = vector.broadcast %72 : vector<1x128xf32> to vector<8x128xf32>
    %74 = vector.broadcast %cst_19 : f32 to vector<8x128xf32>
    %75 = arith.select %71, %73, %74 : vector<8x128xi1>, vector<8x128xf32>
    %76 = arith.addf %67, %75 : vector<8x128xf32>
    %77 = vector.shape_cast %55 : vector<8x128xf32> to vector<8x1x128xf32>
    %78 = vector.shape_cast %76 : vector<8x128xf32> to vector<1x8x128xf32>
    %79 = vector.broadcast %77 : vector<8x1x128xf32> to vector<8x8x128xf32>
    %80 = vector.broadcast %78 : vector<1x8x128xf32> to vector<8x8x128xf32>
    %81 = arith.mulf %79, %80 : vector<8x8x128xf32>
    %82 = vector.shape_cast %81 : vector<8x8x128xf32> to vector<64x128xf32>
    %83 = arith.subf %8, %23 : vector<1x128xf32>
    %c8_i32 = arith.constant 8 : i32
    %84 = arith.muli %arg2, %c8_i32 : i32
    %c0_i32_20 = arith.constant 0 : i32
    %85 = arith.addi %84, %c0_i32_20 : i32
    %86 = tpu.iota {dimensions = array<i32: 0>} : vector<8x128xi32>
    %87 = vector.broadcast %85 : i32 to vector<8x128xi32>
    %88 = arith.addi %86, %87 : vector<8x128xi32>
    %89 = vector.broadcast %28 : vector<1x128xi32> to vector<8x128xi32>
    %90 = arith.cmpi eq, %88, %89 : vector<8x128xi32>
    %cst_21 = arith.constant 1.000000e+00 : f32
    %91 = vector.broadcast %cst_21 : f32 to vector<1x128xf32>
    %92 = arith.subf %91, %83 : vector<1x128xf32>
    %cst_22 = arith.constant 0.000000e+00 : f32
    %93 = vector.shape_cast %92 : vector<1x128xf32> to vector<1x128xf32>
    %94 = vector.broadcast %93 : vector<1x128xf32> to vector<8x128xf32>
    %95 = vector.broadcast %cst_22 : f32 to vector<8x128xf32>
    %96 = arith.select %90, %94, %95 : vector<8x128xi1>, vector<8x128xf32>
    %c1_i32_23 = arith.constant 1 : i32
    %97 = vector.broadcast %c1_i32_23 : i32 to vector<1x128xi32>
    %98 = arith.addi %28, %97 : vector<1x128xi32>
    %99 = vector.broadcast %98 : vector<1x128xi32> to vector<8x128xi32>
    %100 = arith.cmpi eq, %88, %99 : vector<8x128xi32>
    %cst_24 = arith.constant 0.000000e+00 : f32
    %101 = vector.shape_cast %83 : vector<1x128xf32> to vector<1x128xf32>
    %102 = vector.broadcast %101 : vector<1x128xf32> to vector<8x128xf32>
    %103 = vector.broadcast %cst_24 : f32 to vector<8x128xf32>
    %104 = arith.select %100, %102, %103 : vector<8x128xi1>, vector<8x128xf32>
    %105 = arith.addf %96, %104 : vector<8x128xf32>
    %106 = vector.shape_cast %105 : vector<8x128xf32> to vector<8x1x128xf32>
    %107 = vector.shape_cast %82 : vector<64x128xf32> to vector<1x64x128xf32>
    %108 = vector.broadcast %106 : vector<8x1x128xf32> to vector<8x64x128xf32>
    %109 = vector.broadcast %107 : vector<1x64x128xf32> to vector<8x64x128xf32>
    %110 = arith.mulf %108, %109 : vector<8x64x128xf32>
    %111 = vector.shape_cast %110 : vector<8x64x128xf32> to vector<512x128xf32>
    %c0_25 = arith.constant 0 : index
    %c0_26 = arith.constant 0 : index
    %c0_27 = arith.constant 0 : index
    %112 = vector.load %arg4[%c0_25, %c0_26, %c0_27] : memref<1x4x512xbf16, #tpu.memory_space<vmem>>, vector<1x4x512xbf16>
    %113 = vector.shape_cast %112 : vector<1x4x512xbf16> to vector<4x512xbf16>
    %114 = arith.truncf %111 : vector<512x128xf32> to vector<512x128xbf16>
    %cst_28 = arith.constant dense<0.000000e+00> : vector<4x128xf32>
    %115 = tpu.matmul %113, %114, %cst_28 {dimension_numbers = #tpu.dot_dimension_numbers<[1], [0], [0], [1], [0, 0, 1, 1], [], []>} : vector<4x512xbf16>, vector<512x128xbf16>, vector<4x128xf32> -> vector<4x128xf32>
    %c0_29 = arith.constant 0 : index
    %c0_30 = arith.constant 0 : index
    %c0_31 = arith.constant 0 : index
    %116 = vector.load %arg5[%c0_29, %c0_30, %c0_31] : memref<1x4x128xf32, #tpu.memory_space<vmem>>, vector<1x4x128xf32>
    %117 = vector.shape_cast %116 : vector<1x4x128xf32> to vector<4x128xf32>
    %118 = vector.shape_cast %115 : vector<4x128xf32> to vector<1x4x128xf32>
    tpu.vector_store %arg5[%c0_29, %c0_30, %c0_31], %118 {strides = array<i32>} : memref<1x4x128xf32, #tpu.memory_space<vmem>>, vector<1x4x128xf32>,
    return
  }
  func.func @transform_0(%arg0: i32, %arg1: i32, %arg2: i32) -> (i32, i32, i32) {
    %c0_i32 = arith.constant 0 : i32
    %c0_i32_0 = arith.constant 0 : i32
    return %arg0, %c0_i32, %arg1 : i32, i32, i32
  }
  func.func @transform_1(%arg0: i32, %arg1: i32, %arg2: i32) -> (i32, i32, i32) {
    %c0_i32 = arith.constant 0 : i32
    %c0_i32_0 = arith.constant 0 : i32
    return %arg0, %c0_i32, %arg2 : i32, i32, i32
  }
  func.func @transform_2(%arg0: i32, %arg1: i32, %arg2: i32) -> (i32, i32, i32) {
    %c0_i32 = arith.constant 0 : i32
    %c0_i32_0 = arith.constant 0 : i32
    return %arg0, %c0_i32, %arg1 : i32, i32, i32
  }
}

</mosaic_0001>

<bundles_post_ra>
// kernel: tpu_custom_call.1
= control target key start
LH: loop header
LB: loop body
LE: loop exit
PB: predicated region body
PF: predicated region fallthrough
CT: control target
= control target key end

     0   :  { %7 = vsyncpa [#allocation7], 0  ;;  %s1404_s0 = inlined_call_operand.vmem [shape: f32[2,3,256], index: 0, kind: input, shape index: {}]   ;;  %s1405_s1 = inlined_call_operand.vmem [shape: bf16[2,4,512], index: 1, kind: input, shape index: {}]   ;;  %s1406_s2 = inlined_call_operand.hbm [shape: f32[2,4,256], index: 2, kind: output, shape index: {}]  }
   0x1   :  { %9 = vsyncpa [#allocation7 + $0x1], 0  ;;  %s1043_s9 = smov 0   ;;  %s1045_s10 = smov 0  }
   0x2   :  { %s1047_s11 = smov 0   ;;  %s1049_s12 = smov 0  }
   0x3   :  { %s1051_s13 = smov 0   ;;  %s1053_s14 = smov 0  }
   0x4   :  { %s1055_s15 = smov 0   ;;  %s1057_s16 = smov 0  }
   0x5 LB: > { %s792_s17 = sadd.s32 4294967295, %s1023_s16   ;;  %s793_s18 = sadd.s32 4294967294, %s1023_s16   ;;  %s1023_s16 = sphi %s1057_s16, %s15_s16   ;;  %s1019_s15 = sphi %s1055_s15, %s1415_s15   ;;  %s1015_s14 = sphi %s1053_s14, %s1414_s14   ;;  %s1011_s13 = sphi %s1051_s13, %s1413_s13   ;;  %s1007_s12 = sphi %s1049_s12, %s1412_s12   ;;  %s1003_s11 = sphi %s1047_s11, %s1411_s11   ;;  %s999_s10 = sphi %s1045_s10, %s1410_s10   ;;  %s995_s9 = sphi %s1043_s9, %s1409_s9  }
   0x6   : > { %s30_s19 = sadd.s32 1, %s1015_s14  ;;  %s34_s20 = sadd.s32 1, %s1019_s15 }
   0x7   : > { %p32_p0 = scmp.ge.s32.totalorder %s30_s19, 2  ;;  %p109_p1 = scmp.ne.s32.totalorder %s1003_s11, %s999_s10 }
   0x8   : > { %p110_p2 = scmp.eq.s32.totalorder %s792_s17, 3  ;;  %p115_p5 = scmp.ne.s32.totalorder %s999_s10, %s995_s9 }
   0x9   : > { %s1417_s19 = smov (%p32_p0, %s30_s19), 0  ;;  %s1419_s20 = smov (!%p32_p0, %s34_s20), %s1019_s15 }
   0xa   : > { %s95_s21 = ssub.s32 %s1015_s14, %s1417_s19  ;;  %p1094_p3 = por %p110_p2, %p109_p1 }
   0xb   : > { %p36_p4 = scmp.ge.s32.totalorder %s1419_s20, 2  ;;  %p116_p6 = scmp.eq.s32.totalorder %s793_s18, 3 }
   0xc   : > { %p796_p7 = scmp.ge.s32.totalorder %s1023_s16, 1  ;;  %p158_p9 = scmp.lt.s32.totalorder %s1023_s16, 5 }
   0xd   : > { %s1421_s20 = smov (%p36_p4, %s1419_s20), 0  ;;  %p1103_p8 = por %p116_p6, %p115_p5 }
   0xe   : > { %s94_s24 = ssub.s32 %s1019_s15, %s1421_s20  ;;  %s99_s25 = sadd.s32 1, %s1003_s11 }
   0xf   : > { %s96_s26 = sor.u32 %s95_s21, %s94_s24  ;;  %p159_p10 = pnand %p796_p7, %p158_p9 }
  0x10   : > { %p97_p11 = scmp.eq.s32.totalorder %s96_s26, 0  ;;  %p192_p12 = scmp.lt.s32.totalorder (!%p159_p10), %s1011_s13, 1  ;;  %v219_v0 = vlaneseq (!%p159_p10)  ;;  %v1025_v1 = vmov (!%p159_p10), 1983009808   ;;  %v1026_v17 = vmov (!%p159_p10), 1966171168  }
  0x11   : > { %162 = sbr.rel (%p159_p10) target bundleno = 333 (0x14d), region = 28  ;;  %p194_p13 = scmp.lt.s32.totalorder (!%p159_p10), %s1007_s12, 1  ;;  %v577_v2 = vunpack.c.l.s4 (!%p159_p10), %v1025_v1  ;;  %v268_v18 = vunpack.c.l.s4 (!%p159_p10), %v1026_v17 }
  0x12   : > { %s1112_s27 = scalar_select %p97_p11, %s1003_s11, %s99_s25  }
  0x13   : > { %v220_v3 = vshrl.u32 (!%p159_p10), %v219_v0, 7  ;;  %v578_v4 = vunpack.c.0.s8 (!%p159_p10), %v577_v2  ;;  %v269_v26 = vunpack.c.0.s8 (!%p159_p10), %v268_v18  ;;  %s189_s24 = sand.u32 (!%p159_p10), 1, %s999_s10   ;;  %s804_s26 = sshll.u32 (!%p159_p10), %s1011_s13, 1 }
  0x14   : > { %s797_s25 = sshll.u32 (!%p159_p10), %s189_s24, 2 }
  0x15   : > { %v581_v5 = vsub.s32 (!%p159_p10), %v578_v4, %v220_v3  ;;  %v223_v21 = vsub.s32 (!%p159_p10), 1, %v220_v3  ;;  %v1132_v22 = vsub.s32 (!%p159_p10), 0, %v220_v3  ;;  %v246_v25 = vsub.s32 (!%p159_p10), 2, %v220_v3 }
  0x16   : > { %v1136_v36 = vsub.s32 (!%p159_p10), %v269_v26, %v220_v3 }
  0x18   : > { %s193_s28 = scalar_select %p192_p12, %s1011_s13, 1 }
  0x19   : > { %s195_s29 = scalar_select %p194_p13, %s1007_s12, 1 }
  0x1a   : > { %s798_s30 = sshll.u32 %s193_s28, 1  ;;  %s808_s3 = sshll.u32 %s193_s28, 3 }
  0x1b   : > { %s197_s4 = sadd.s32 %s798_s30, %s195_s29  ;;  %s208_s7 = scalar_lea.vmem %s1405_s1, %s808_s3 }
  0x1c   : > { %s799_s8 = sshll.u32 %s197_s4, 2  ;;  %v541_v6 = vld [vmem:[%s208_s7] sm:$0xff]  ;;  %s689_s28 = sadd.s32 %s1007_s12, %s804_s26 }
  0x1d   : > { %s199_s21 = scalar_lea.vmem %s1404_s0, %s799_s8  ;;  %v1124_v7 = vrot.slane %v541_v6, %v581_v5  ;;  %v575_v8 = vcombine.high %v541_v6, %v541_v6  ;;  %s805_s29 = sshll.u32 %s689_s28, 6 }
  0x1e   : > { %v211_v9 = vld [vmem:[%s199_s21] sm:$0x7]  ;;  %s191_s30 = scalar_lea.vmem [#allocation6], %s797_s25  ;;  %s1351_s13 = scalar_lea.hbm %s1406_s2, %s805_s29 }
  0x1f   : > { %v212_v10 = vadd.f32 2.0, %v211_v9  ;;  %v590_v11 = vcombine.high %v1124_v7, %v1124_v7  ;;  %v1128_v12 = vrot.slane %v575_v8, %v581_v5  ;;  %s693_s3 = sshll.u32 %s191_s30, 4  ;;  %s678_s12 = scalar_lea.sflag [#allocation7], %s189_s24  ;;  %s1353_s3 = int_to_ptr.vmem [resolvable:$true] %s693_s3 }
  0x20   : > { %s929_s6 = scalar_lea.vmem %s1353_s3, 64  ;;  %s1027_s7 = smov [#allocation6]  }
  0x21   : > { %v213_v13 = vmax.f32 %v212_v10, 0.0  ;;  %628 = vmatprep.mubr.bf16.mxu0 %v590_v11  ;;  %v591_v14 = vcombine.high %v1128_v12, %v1128_v12  ;;  %p930_p0 = scmp.ne.s32.totalorder %s1353_s3, %s929_s6  ;;  %s933_s8 = sshll.u32 %s1027_s7, 4  ;;  %s934_s8 = int_to_ptr.vmem [resolvable:$false] %s933_s8 }
  0x22   : > { %s935_s17 = scalar_lea.vmem %s934_s8, 128  ;;  %p936_p4 = scmp.lt.s32.totalorder %s1353_s3, %s934_s8 }
  0x23   : > { %v214_v15 = vmin.f32 %v213_v13, 10.0  ;;  %668 = vmatprep.mubr.bf16.mxu1 %v591_v14  ;;  %p931_p1 = pnand %p930_p0, %p1094_p3  ;;  %p937_p5 = scmp.lt.s32.totalorder %s935_s17, %s929_s6 }
  0x25   : > { %v215_v16 = vfloor.f32 %v214_v15  ;;  %p932_p2 = pneg %p931_p1  ;;  %p938_p6 = por %p937_p5, %p936_p4 }
  0x27   : > { %v853_v19 = vtrunc.f32 %v215_v16  ;;  %v218_v20 = vsub.f32 %v214_v15, %v215_v16  ;;  %p939_p7 = pnand %p938_p6, %p932_p2 }
  0x29   : > { %v854_v23 = vcvt.f32.s32 %v853_v19  ;;  %v226_v24 = vsub.f32 1.0, %v218_v20  ;;  %v241_v34 = vrot.slane %v218_v20, %v223_v21  ;;  %v262_v35 = vrot.slane %v218_v20, %v246_v25 }
  0x2a   : > { %v384_v39 = vrot.slane %v218_v20, %v1132_v22 }
  0x2b   : > { %v802_v27 = vadd.s32 4294967294, %v854_v23  ;;  %v230_v28 = vrot.slane %v226_v24, %v223_v21  ;;  %v374_v29 = vrot.slane %v226_v24, %v1132_v22  ;;  %v252_v41 = vrot.slane %v226_v24, %v246_v25 }
  0x2d   : > { %v224_v30 = vrot.slane %v802_v27, %v223_v21  ;;  %v232_v31 = vadd.s32 1, %v802_v27  ;;  %v247_v32 = vrot.slane %v802_v27, %v246_v25  ;;  %v369_v33 = vrot.slane %v802_v27, %v1132_v22 }
  0x2f   : > { %vm225_vm0 = vcmp.eq.s32.totalorder %v220_v3, %v224_v30  ;;  %v236_v37 = vrot.slane %v232_v31, %v223_v21  ;;  %v257_v38 = vrot.slane %v232_v31, %v246_v25  ;;  %vm370_vm1 = vcmp.eq.s32.totalorder %v220_v3, %v369_v33 }
  0x30   : > { %v231_v40 = vsel %vm225_vm0, %v230_v28, 0.0  ;;  %v379_v42 = vrot.slane %v232_v31, %v1132_v22  ;;  %vm248_vm3 = vcmp.eq.s32.totalorder %v220_v3, %v247_v32  ;;  %v375_v43 = vsel %vm370_vm1, %v374_v29, 0.0 }
  0x31   : > { %vm237_vm2 = vcmp.eq.s32.totalorder %v220_v3, %v236_v37  ;;  %vm258_vm4 = vcmp.eq.s32.totalorder %v220_v3, %v257_v38  ;;  %v253_v47 = vsel %vm248_vm3, %v252_v41, 0.0 }
  0x32   : > { %v242_v44 = vsel %vm237_vm2, %v241_v34, 0.0  ;;  %vm380_vm5 = vcmp.eq.s32.totalorder %v220_v3, %v379_v42  ;;  %v263_v48 = vsel %vm258_vm4, %v262_v35, 0.0 }
  0x33   : > { %v243_v45 = vadd.f32 %v242_v44, %v231_v40  ;;  %v385_v46 = vsel %vm380_vm5, %v384_v39, 0.0  ;;  %v1144_v54 = vadd.f32 %v263_v48, %v253_v47 }
  0x34   : > { %v386_v49 = vadd.f32 %v385_v46, %v375_v43 }
  0x35   : > { %v266_v50 = vcombine.high %v243_v45, %v243_v45  ;;  %v273_v51 = vrot.slane %v243_v45, %v1136_v36 }
  0x36   : > { %v1142_v52 = vrot.slane %v386_v49, %v1136_v36  ;;  %v388_v53 = vcombine.high %v386_v49, %v386_v49 }
  0x37   : > { %v281_v55 = vcombine.high %v273_v51, %v273_v51  ;;  %v289_v56 = vrot.slane %v273_v51, %v1136_v36  ;;  %v280_v57 = vrot.slane %v266_v50, %v1136_v36 }
  0x38   : > { %v403_v58 = vcombine.high %v1142_v52, %v1142_v52  ;;  %v411_v59 = vrot.slane %v1142_v52, %v1136_v36  ;;  %v402_v60 = vrot.slane %v388_v53, %v1136_v36 }
  0x39   : > { %v303_v61 = vrot.slane %v281_v55, %v1136_v36  ;;  %v311_v62 = vcombine.high %v289_v56, %v289_v56  ;;  %v318_v63 = vrot.slane %v289_v56, %v1132_v22  ;;  %v282_v0 = vcombine.high %v280_v57, %v280_v57 }
  0x3a   : > { %v433_v1 = vcombine.high %v411_v59, %v411_v59  ;;  %v404_v2 = vcombine.high %v402_v60, %v402_v60  ;;  %v418_v3 = vrot.slane %v402_v60, %v1136_v36  ;;  %v1157_v4 = vrot.slane %v411_v59, %v1132_v22 }
  0x3b   : > { %v313_v5 = vcombine.high %v303_v61, %v303_v61  ;;  %v322_v6 = vrot.slane %v303_v61, %v1132_v22  ;;  %v1161_v8 = vmul.f32 %v318_v63, %v1144_v54  ;;  %v326_v9 = vrot.slane %v311_v62, %v1132_v22 }
  0x3c   : > { %v1165_v10 = vrot.slane %v433_v1, %v1132_v22  ;;  %v434_v11 = vcombine.high %v418_v3, %v418_v3  ;;  %v1168_v13 = vrot.slane %v418_v3, %v1132_v22  ;;  %v296_v14 = vrot.slane %v280_v57, %v1136_v36 }
  0x3d   : > { %v1172_v15 = vmul.f32 %v322_v6, %v1144_v54  ;;  %v477_v16 = vmul.f32 %v1157_v4, %v1161_v8  ;;  %v330_v17 = vrot.slane %v313_v5, %v1132_v22  ;;  %v1178_v18 = vmul.f32 %v326_v9, %v1144_v54 }
  0x3e   : > { %v493_v19 = vmul.f32 %v1165_v10, %v1161_v8  ;;  %v1183_v20 = vrot.slane %v434_v11, %v1132_v22  ;;  %v509_v21 = vmul.f32 %v1168_v13, %v1161_v8  ;;  %v310_v23 = vrot.slane %v282_v0, %v1136_v36 }
  0x3f   : > { %v494_v24 = vmul.f32 %v1165_v10, %v1172_v15  ;;  %v478_v25 = vmul.f32 %v1157_v4, %v1172_v15  ;;  %v510_v26 = vmul.f32 %v1168_v13, %v1172_v15  ;;  %v1195_v27 = vmul.f32 %v330_v17, %v1144_v54 }
  0x40   : > { %v525_v28 = vmul.f32 %v1183_v20, %v1161_v8  ;;  %v526_v29 = vmul.f32 %v1183_v20, %v1172_v15  ;;  %v495_v30 = vmul.f32 %v1165_v10, %v1178_v18  ;;  %v527_v31 = vmul.f32 %v1183_v20, %v1178_v18 }
  0x41   : > { %v550_v32 = vpack.c.bf16 %v494_v24, %v493_v19  ;;  %v542_v33 = vpack.c.bf16 %v478_v25, %v477_v16  ;;  %v558_v34 = vpack.c.bf16 %v510_v26, %v509_v21  ;;  %v496_v35 = vmul.f32 %v1165_v10, %v1195_v27 }
  0x42   : > { %v566_v37 = vpack.c.bf16 %v526_v29, %v525_v28  ;;  %v528_v38 = vmul.f32 %v1183_v20, %v1195_v27  ;;  %v479_v39 = vmul.f32 %v1157_v4, %v1178_v18  ;;  %v480_v40 = vmul.f32 %v1157_v4, %v1195_v27 }
  0x43   : > { %809 = vmatprep.subr.bf16.mxu0 %v550_v32  ;;  %v551_v41 = vpack.c.bf16 %v496_v35, %v495_v30  ;;  %v511_v42 = vmul.f32 %v1168_v13, %v1178_v18  ;;  %v512_v43 = vmul.f32 %v1168_v13, %v1195_v27  ;;  %v334_v44 = vrot.slane %v296_v14, %v1132_v22 }
  0x44   : > { %831 = vmatprep.subr.bf16.mxu1 %v566_v37  ;;  %810 = vmatpush3.bf16.msra.mxu0 %v542_v33  ;;  %v567_v45 = vpack.c.bf16 %v528_v38, %v527_v31  ;;  %v543_v46 = vpack.c.bf16 %v480_v40, %v479_v39  ;;  %v338_v47 = vrot.slane %v310_v23, %v1132_v22 }
  0x45   : > { %832 = vmatpush3.bf16.msra.mxu1 %v558_v34  ;;  %811 = vmatprep.subr.bf16.mxu0 %v551_v41  ;;  %v559_v48 = vpack.c.bf16 %v512_v43, %v511_v42  ;;  %v1220_v49 = vmul.f32 %v334_v44, %v1144_v54  ;;  %v312_v50 = vcombine.high %v296_v14, %v296_v14 }
  0x46   : > { %833 = vmatprep.subr.bf16.mxu1 %v567_v45  ;;  %v1223_v51 = vmul.f32 %v338_v47, %v1144_v54  ;;  %v314_v52 = vcombine.high %v310_v23, %v310_v23  ;;  %v425_v53 = vrot.slane %v403_v58, %v1136_v36  ;;  %v432_v55 = vrot.slane %v404_v2, %v1136_v36 }
  0x47   : > { %v497_v56 = vmul.f32 %v1165_v10, %v1220_v49  ;;  %v529_v57 = vmul.f32 %v1183_v20, %v1220_v49  ;;  %v481_v59 = vmul.f32 %v1157_v4, %v1220_v49  ;;  %v513_v60 = vmul.f32 %v1168_v13, %v1220_v49 }
  0x48   : > { %812 = vmatpush3.bf16.msra.mxu0 %v543_v46  ;;  %v498_v61 = vmul.f32 %v1165_v10, %v1223_v51  ;;  %v530_v58 = vmul.f32 %v1183_v20, %v1223_v51  ;;  %v482_v36 = vmul.f32 %v1157_v4, %v1223_v51  ;;  %v514_v62 = vmul.f32 %v1168_v13, %v1223_v51 }
  0x49   : > { %834 = vmatpush3.bf16.msra.mxu1 %v559_v48  ;;  %v342_v63 = vrot.slane %v312_v50, %v1132_v22  ;;  %v346_v0 = vrot.slane %v314_v52, %v1132_v22  ;;  %v435_v1 = vcombine.high %v425_v53, %v425_v53  ;;  %v436_v2 = vcombine.high %v432_v55, %v432_v55 }
  0x4a   : > { %v552_v3 = vpack.c.bf16 %v498_v61, %v497_v56  ;;  %v568_v5 = vpack.c.bf16 %v530_v58, %v529_v57  ;;  %v544_v6 = vpack.c.bf16 %v482_v36, %v481_v59  ;;  %v560_v9 = vpack.c.bf16 %v514_v62, %v513_v60 }
  0x4b   : > { %v1246_v11 = vmul.f32 %v342_v63, %v1144_v54  ;;  %v1249_v14 = vmul.f32 %v346_v0, %v1144_v54  ;;  %v1252_v16 = vrot.slane %v435_v1, %v1132_v22  ;;  %v1255_v17 = vrot.slane %v436_v2, %v1132_v22 }
  0x4c   : > { %813 = vmatprep.subr.bf16.mxu0 %v552_v3  ;;  %835 = vmatprep.subr.bf16.mxu1 %v568_v5  ;;  %v1258_v19 = vrot.slane %v425_v53, %v1132_v22  ;;  %v1261_v21 = vrot.slane %v432_v55, %v1132_v22 }
  0x4d   : > { %814 = vmatpush3.bf16.msra.mxu0 %v544_v6  ;;  %836 = vmatpush3.bf16.msra.mxu1 %v560_v9  ;;  %v499_v54 = vmul.f32 %v1165_v10, %v1246_v11  ;;  %v500_v23 = vmul.f32 %v1165_v10, %v1249_v14  ;;  %v531_v24 = vmul.f32 %v1183_v20, %v1246_v11 }
  0x4e   : > { %v532_v25 = vmul.f32 %v1183_v20, %v1249_v14  ;;  %v483_v26 = vmul.f32 %v1157_v4, %v1246_v11  ;;  %v484_v22 = vmul.f32 %v1157_v4, %v1249_v14  ;;  %v515_v28 = vmul.f32 %v1168_v13, %v1246_v11 }
  0x4f   : > { %v553_v29 = vpack.c.bf16 %v500_v23, %v499_v54  ;;  %v516_v30 = vmul.f32 %v1168_v13, %v1249_v14  ;;  %v501_v10 = vmul.f32 %v1252_v16, %v1161_v8  ;;  %v502_v31 = vmul.f32 %v1252_v16, %v1172_v15 }
  0x50   : > { %v569_v20 = vpack.c.bf16 %v532_v25, %v531_v24  ;;  %v545_v32 = vpack.c.bf16 %v484_v22, %v483_v26  ;;  %v533_v33 = vmul.f32 %v1255_v17, %v1161_v8  ;;  %v534_v4 = vmul.f32 %v1255_v17, %v1172_v15 }
  0x51   : > { %815 = vmatprep.subr.bf16.mxu0 %v553_v29  ;;  %v561_v34 = vpack.c.bf16 %v516_v30, %v515_v28  ;;  %v554_v35 = vpack.c.bf16 %v502_v31, %v501_v10  ;;  %v485_v13 = vmul.f32 %v1258_v19, %v1161_v8  ;;  %v486_v37 = vmul.f32 %v1258_v19, %v1172_v15 }
  0x52   : > { %837 = vmatprep.subr.bf16.mxu1 %v569_v20  ;;  %816 = vmatpush3.bf16.msra.mxu0 %v545_v32  ;;  %v570_v38 = vpack.c.bf16 %v534_v4, %v533_v33  ;;  %v517_v39 = vmul.f32 %v1261_v21, %v1161_v8  ;;  %v518_v40 = vmul.f32 %v1261_v21, %v1172_v15 }
  0x53   : > { %838 = vmatpush3.bf16.msra.mxu1 %v561_v34  ;;  %817 = vmatprep.subr.bf16.mxu0 %v554_v35  ;;  %v546_v41 = vpack.c.bf16 %v486_v37, %v485_v13  ;;  %v503_v42 = vmul.f32 %v1252_v16, %v1178_v18  ;;  %v504_v43 = vmul.f32 %v1252_v16, %v1195_v27 }
  0x54   : > { %839 = vmatprep.subr.bf16.mxu1 %v570_v38  ;;  %v562_v44 = vpack.c.bf16 %v518_v40, %v517_v39  ;;  %v535_v45 = vmul.f32 %v1255_v17, %v1178_v18  ;;  %v536_v8 = vmul.f32 %v1255_v17, %v1195_v27  ;;  %v487_v15 = vmul.f32 %v1258_v19, %v1178_v18 }
  0x55   : > { %v555_v46 = vpack.c.bf16 %v504_v43, %v503_v42  ;;  %v488_v47 = vmul.f32 %v1258_v19, %v1195_v27  ;;  %v519_v48 = vmul.f32 %v1261_v21, %v1178_v18  ;;  %v520_v50 = vmul.f32 %v1261_v21, %v1195_v27 }
  0x56   : > { %818 = vmatpush3.bf16.msra.mxu0 %v546_v41  ;;  %v571_v52 = vpack.c.bf16 %v536_v8, %v535_v45  ;;  %v505_v53 = vmul.f32 %v1252_v16, %v1220_v49  ;;  %v506_v55 = vmul.f32 %v1252_v16, %v1223_v51  ;;  %v537_v56 = vmul.f32 %v1255_v17, %v1220_v49 }
  0x57   : > { %840 = vmatpush3.bf16.msra.mxu1 %v562_v44  ;;  %819 = vmatprep.subr.bf16.mxu0 %v555_v46  ;;  %v547_v57 = vpack.c.bf16 %v488_v47, %v487_v15  ;;  %v563_v59 = vpack.c.bf16 %v520_v50, %v519_v48  ;;  %v538_v18 = vmul.f32 %v1255_v17, %v1223_v51 }
  0x58   : > { %841 = vmatprep.subr.bf16.mxu1 %v571_v52  ;;  %v556_v27 = vpack.c.bf16 %v506_v55, %v505_v53  ;;  %v489_v60 = vmul.f32 %v1258_v19, %v1220_v49  ;;  %v490_v61 = vmul.f32 %v1258_v19, %v1223_v51  ;;  %v521_v58 = vmul.f32 %v1261_v21, %v1220_v49 }
  0x59   : > { %v572_v36 = vpack.c.bf16 %v538_v18, %v537_v56  ;;  %v522_v62 = vmul.f32 %v1261_v21, %v1223_v51  ;;  %v507_v63 = vmul.f32 %v1252_v16, %v1246_v11  ;;  %v508_v0 = vmul.f32 %v1252_v16, %v1249_v14 }
  0x5a   : > { %820 = vmatpush3.bf16.msra.mxu0 %v547_v57  ;;  %v548_v1 = vpack.c.bf16 %v490_v61, %v489_v60  ;;  %v539_v2 = vmul.f32 %v1255_v17, %v1246_v11  ;;  %v540_v3 = vmul.f32 %v1255_v17, %v1249_v14  ;;  %v491_v49 = vmul.f32 %v1258_v19, %v1246_v11 }
  0x5b   : > { %842 = vmatpush3.bf16.msra.mxu1 %v563_v59  ;;  %821 = vmatprep.subr.bf16.mxu0 %v556_v27  ;;  %v564_v51 = vpack.c.bf16 %v522_v62, %v521_v58  ;;  %v557_v5 = vpack.c.bf16 %v508_v0, %v507_v63  ;;  %v492_v6 = vmul.f32 %v1258_v19, %v1249_v14 }
  0x5c   : > { %843 = vmatprep.subr.bf16.mxu1 %v572_v36  ;;  %v573_v9 = vpack.c.bf16 %v540_v3, %v539_v2  ;;  %v523_v16 = vmul.f32 %v1261_v21, %v1246_v11  ;;  %v524_v17 = vmul.f32 %v1261_v21, %v1249_v14 }
  0x5d   : > { %v549_v54 = vpack.c.bf16 %v492_v6, %v491_v49 }
  0x5e   : > { %822 = vmatpush3.bf16.msra.mxu0 %v548_v1  ;;  %v565_v23 = vpack.c.bf16 %v524_v17, %v523_v16 }
  0x5f   : > { %844 = vmatpush3.bf16.msra.mxu1 %v564_v51  ;;  %823 = vmatprep.subr.bf16.mxu0 %v557_v5 }
  0x60   : > { %845 = vmatprep.subr.bf16.mxu1 %v573_v9 }
  0x62   : > { %824 = vmatpush3.bf16.msra.mxu0 %v549_v54 }
  0x63   : > { %846 = vmatpush3.bf16.msra.mxu1 %v565_v23 }
  0x65   : > { %629 = vmatmul.mubr.bf16.vlgmr.msra.gmra.mrb[0].mxu0 %v1124_v7 }
  0x66   : > { %669 = vmatmul.mubr.bf16.vlgmr.msra.gmra.mrb[0].mxu1 %v1128_v12 }
 0x138   : > { %v825_v11 = vpop.f32.mrb[0].mxu0 }
 0x139   : > { %v847_v19 = vpop.f32.mrb[0].mxu1  ;;  %v826_v24 = vpop.f32.mrb[1].mxu0 }
 0x13a   : > { %v827_v14 = vadd.f32 %v826_v24, %v825_v11  ;;  %v848_v21 = vpop.f32.mrb[1].mxu1  ;;  %v828_v25 = vpop.f32.mrb[2].mxu0 }
 0x13b   : > { %v849_v26 = vadd.f32 %v848_v21, %v847_v19  ;;  %v850_v22 = vpop.f32.mrb[2].mxu1  ;;  %v829_v28 = vpop.f32.mrb[3].mxu0 }
 0x13c   : > { %v851_v7 = vpop.f32.mrb[3].mxu1 }
 0x13d   : > { %v671_v29 = vadd.f32 %v849_v26, %v827_v14 }
 0x13f   : > { %676 = vst [vmem:[%s191_s30] sm:$0xf] %v671_v29 }
 0x140   : > { %942 = shalt.err (!%p939_p7)
}
 0x141   : > { %s943_s18 = scalar_lea.hbm %s1351_s13, 64  ;;  %s947_s25 = scalar_lea.hbm %s1406_s2, 256 }
 0x142   : > { %p944_p9 = scmp.ne.s32.totalorder %s1351_s13, %s943_s18  ;;  %p948_p12 = scmp.lt.u32.totalorder %s1351_s13, %s1406_s2 }
 0x143   : > { %p949_p13 = scmp.lt.u32.totalorder %s947_s25, %s943_s18  ;;  %p951_p1 = scmp.lt.u32.totalorder %s943_s18, %s1351_s13 }
 0x144   : > { %p945_p10 = pnand %p944_p9, %p1094_p3 }
 0x145   : > { %p950_p0 = por %p949_p13, %p948_p12 }
 0x146   : > { %p946_p11 = pneg %p945_p10 }
 0x147   : > { %p952_p2 = por %p951_p1, %p950_p0 }
 0x149   : > { %p953_p4 = pnand %p952_p2, %p946_p11 }
 0x14b   : > { %956 = shalt.err (!%p953_p4)
}
 0x14c   : > { %855 = dma.vmem_to_hbm [thread:$0]  (%p1094_p3), %s1353_s3, 64, %s1351_s13, %s678_s12  }
 0x14d PF: > { %p861_p5 = scmp.ge.s32.totalorder %s1023_s16, 2  ;;  %s705_s29 = sand.u32 1, %s995_s9  }
 0x14e   : > { %s706_s30 = scalar_lea.sflag [#allocation7], %s705_s29 }
 0x14f   : > { %p858_p6 = pnand %p861_p5, %p1103_p8 }
 0x151   : > { %990 = dma.done.wait (!%p858_p6), %s706_s30, 64  }
 0x152   : > { %992 = vsyncadd (!%p858_p6), %s706_s30, 4294967232  ;;  %s15_s16 = sadd.s32 1, %s1023_s16   ;;  %s1409_s9 = smov %s999_s10 }
 0x153   : > { %p12_p7 = scmp.ge.s32.totalorder %s15_s16, 6   ;;  %s1410_s10 = smov %s1003_s11 }
 0x154   : > { %s1411_s11 = smov %s1112_s27  ;;  %s1412_s12 = smov %s1015_s14 }
 0x155   : > { %s1413_s13 = smov %s1019_s15  ;;  %s1414_s14 = smov %s1417_s19 }
 0x156   : > { %s1415_s15 = smov %s1421_s20  ;;  %14 = sbr.rel (!%p12_p7) target bundleno = 5 (0x5), region = 66 }
 0x15d   :  { %711 = vsyncpa [#allocation7], 1 }
 0x15e   :  { %713 = vsyncpa [#allocation7 + $0x1], 1 }

</bundles_post_ra>
